<compile_context>
chip_gen: v7x
topology: tpu7x:2x2x1
jax: 0.10.0
libtpu: 0.0.40
codegen_flags: <defaults>
</compile_context>

<pallas_src>
import functools

import jax
import jax.numpy as jnp
from jax.experimental import pallas as pl
from jax.experimental.pallas import tpu as pltpu

IN_FEATURES = 10        # number of feature columns (X.shape[1])
HIDDEN_NEURONS = 10
OUT_FEATURES = 1

LANES = 128             # TPU vreg lane width
DEFAULT_TILE_B = 65536  # batch rows per grid step (multiple of 128)


def _round_up(x, m):
    return ((x + m - 1) // m) * m


def _choose_tile_rows(tr_total, tile_b):
    """Rows-of-128-batch-elements per grid step.

    Picks the largest tile that (a) keeps the double-buffered x tile small in
    VMEM, (b) yields an even number of >= 2 grid steps whenever the batch is
    big enough (so the 'parallel' axis spans both v7x TensorCores with balanced
    work), and (c) is a multiple of 8 sublanes or the full extent, as Mosaic
    requires for the second-to-last block dim.
    """
    max_rows = max(8, tile_b // LANES)
    if tr_total < 16:
        return tr_total                        # single full-extent block
    n_steps = max(2, pl.cdiv(tr_total, max_rows))
    if n_steps % 2:
        n_steps += 1                           # even split -> balanced across 2 TCs
    return min(max_rows, _round_up(pl.cdiv(tr_total, n_steps), 8))


def fused_mlp_sigmoid_kernel(x_ref, w_ref, b_ref, o_ref):
    """One batch tile of sigmoid(x @ w_eff + b_eff), fully lane-dense.

    x_ref : [TR, 128*F]   packed rows: lane 10*l + f holds x[row_base + l, f]
    w_ref : [128*F, 128]  block-diagonal kron(I_128, w_eff), resident in VMEM
    b_ref : [1, 1]        collapsed bias (SMEM scalar)
    o_ref : [TR, 128]     lane-dense outputs (one batch row per lane)
    """
    # MXU contraction: output lane j of row r is  sum_f x[128*r + j, f] * w_eff[f].
    z = jnp.dot(x_ref[...], w_ref[...],
                preferred_element_type=jnp.float32) + b_ref[0, 0]
    # Dense [TR, 128] layout -> only 2 EUP pushes per 1024 outputs; hidden
    # under the per-tile DMA window even on v7x.
    o_ref[...] = jax.nn.sigmoid(z)


@functools.partial(jax.jit, static_argnames=("tile_b",))
def mymodel_forward(x, w1, b1, w2, b2, tile_b=DEFAULT_TILE_B):
    """Forward pass of MyModel: sigmoid(linear(input_layer(x))).

    x  : [B, IN_FEATURES]      float32
    w1 : [IN_FEATURES, HIDDEN] float32  (transposed vs. torch layout)
    b1 : [1, HIDDEN]           float32
    w2 : [HIDDEN, 1]           float32
    b2 : [1, 1]                float32
    returns [B, 1] float32
    """
    assert tile_b % LANES == 0 and tile_b >= 1024
    B, F = x.shape
    assert F == IN_FEATURES

    # Collapse the two linear layers (exact algebra; no nonlinearity between).
    # If the weights are static across many calls, w_big / b_eff can be hoisted
    # out and precomputed once.
    w_eff = jnp.dot(w1, w2, precision="highest")             # [F, 1]
    b_eff = jnp.dot(b1, w2, precision="highest") + b2        # [1, 1]
    # Block-diagonal weights so the packed [rows, 128*F] layout contracts to a
    # lane-dense [rows, 128] slab on the MXU:  w_big[F*l + f, l] = w_eff[f].
    w_big = jnp.kron(jnp.eye(LANES, dtype=x.dtype), w_eff)   # [128*F, 128]

    # Pad the batch to 128-lane granularity only (never to a full tile).  When
    # B is already a multiple of 128 this branch (and its copy) disappears.
    b_pad = _round_up(B, LANES)
    if b_pad != B:
        x = jnp.pad(x, ((0, b_pad - B), (0, 0)))
    tr_total = b_pad // LANES

    # Free (bitcast) reshape: row-major [b_pad, F] -> [b_pad/128, 128*F].
    x2 = x.reshape(tr_total, LANES * F)

    tile_rows = _choose_tile_rows(tr_total, tile_b)
    grid = (pl.cdiv(tr_total, tile_rows),)

    out = pl.pallas_call(
        fused_mlp_sigmoid_kernel,
        out_shape=jax.ShapeDtypeStruct((tr_total, LANES), jnp.float32),
        grid_spec=pltpu.PrefetchScalarGridSpec(
            num_scalar_prefetch=0,
            grid=grid,
            in_specs=[
                # Packed x rows stream through VMEM (auto double-buffered).
                pl.BlockSpec((tile_rows, LANES * F), lambda i: (i, 0)),
                # Block-diagonal weights stay resident (constant index map).
                pl.BlockSpec((LANES * F, LANES), lambda i: (0, 0)),
                # Collapsed bias as an SMEM scalar.
                pl.BlockSpec((1, 1), lambda i: (0, 0),
                             memory_space=pltpu.MemorySpace.SMEM),
            ],
            out_specs=pl.BlockSpec((tile_rows, LANES), lambda i: (i, 0)),
        ),
        compiler_params=pltpu.CompilerParams(
            # Batch tiles are independent -> shard across v7x's two TCs;
            # harmless no-op on single-TC v5e/v6e.
            dimension_semantics=("parallel",),
            # Explicit headroom (usage is ~7 MB); <= physical VMEM everywhere.
            vmem_limit_bytes=32 * 1024 * 1024,
        ),
        cost_estimate=pl.CostEstimate(
            flops=2 * tr_total * LANES * (LANES * F),
            transcendentals=tr_total * LANES,
            bytes_accessed=(tr_total * LANES * F * 4      # x stream
                            + LANES * F * LANES * 4       # resident w_big
                            + tr_total * LANES * 4),      # output slab
        ),
    )(x2, w_big, b_eff)

    # Free reshape back to [b_pad, 1]; dropping padded rows is a tiny (4 B/row)
    # output-side slice.
    return out.reshape(b_pad, OUT_FEATURES)[:B]


def init_params(key):
    """Deterministic init mirroring nn.Linear's U(-1/sqrt(fan_in), 1/sqrt(fan_in))."""
    k1, k2, k3, k4 = jax.random.split(key, 4)
    bound1 = 1.0 / jnp.sqrt(jnp.float32(IN_FEATURES))
    bound2 = 1.0 / jnp.sqrt(jnp.float32(HIDDEN_NEURONS))
    # stored as [in, out] so the math is x @ W + b
    w1 = jax.random.uniform(k1, (IN_FEATURES, HIDDEN_NEURONS),
                            jnp.float32, -bound1, bound1)
    b1 = jax.random.uniform(k2, (1, HIDDEN_NEURONS),
                            jnp.float32, -bound1, bound1)
    w2 = jax.random.uniform(k3, (HIDDEN_NEURONS, OUT_FEATURES),
                            jnp.float32, -bound2, bound2)
    b2 = jax.random.uniform(k4, (1, OUT_FEATURES),
                            jnp.float32, -bound2, bound2)
    return w1, b1, w2, b2


if __name__ == "__main__":
    key = jax.random.PRNGKey(0)
    k1, k2, k3, kp = jax.random.split(key, 4)
    w1, b1, w2, b2 = init_params(kp)

    def reference(xx):
        # Same math as the PyTorch module (Linear -> Linear -> Sigmoid).
        h = jnp.dot(xx, w1, precision="highest") + b1
        return jax.nn.sigmoid(jnp.dot(h, w2, precision="highest") + b2)

    # (B, subkey): single-step grid, multi-step lane-aligned grid, and an
    # unaligned batch exercising the 128-row padding path.
    for bsz, kx in ((1024, k1), (4096, k2), (2000, k3)):
        x = jax.random.normal(kx, (bsz, IN_FEATURES), jnp.float32)
        out = jax.block_until_ready(mymodel_forward(x, w1, b1, w2, b2))
        assert out.shape == (bsz, OUT_FEATURES)
        assert jnp.allclose(out, reference(x), atol=1e-5, rtol=1e-5)

    print("KERNEL_OK")
</pallas_src>

<mosaic_0001>
module attributes {stable_mosaic.version = 11 : i64} {
  func.func @fused_mlp_sigmoid_kernel(%arg0: i32, %arg1: memref<8x1280xf32, #tpu.memory_space<vmem>>, %arg2: memref<1280x128xf32, #tpu.memory_space<vmem>>, %arg3: memref<1x1xf32, #tpu.memory_space<smem>>, %arg4: memref<8x128xf32, #tpu.memory_space<vmem>>) attributes {dimension_semantics = [#tpu.dimension_semantics<parallel>], iteration_bounds = array<i64: 1>, scalar_prefetch = 0 : i64, scratch_operands = 0 : i64, tpu.core_type = #tpu.core_type<tc>, window_params = [{transform_indices = @transform_0, window_bounds = array<i64: 8, 1280>}, {pipeline_mode = #tpu.pipeline_mode<synchronous>, transform_indices = @transform_1, window_bounds = array<i64: 1280, 128>}, {transform_indices = @transform_2, window_bounds = array<i64: 1, 1>}, {transform_indices = @transform_3, window_bounds = array<i64: 8, 128>}]} {
    %c0 = arith.constant 0 : index
    %c0_0 = arith.constant 0 : index
    %0 = vector.load %arg1[%c0, %c0_0] : memref<8x1280xf32, #tpu.memory_space<vmem>>, vector<8x1280xf32>
    %c0_1 = arith.constant 0 : index
    %c0_2 = arith.constant 0 : index
    %1 = vector.load %arg2[%c0_1, %c0_2] : memref<1280x128xf32, #tpu.memory_space<vmem>>, vector<1280x128xf32>
    %cst = arith.constant dense<0.000000e+00> : vector<8x128xf32>
    %2 = tpu.matmul %0, %1, %cst {dimension_numbers = #tpu.dot_dimension_numbers<[1], [0], [0], [1], [0, 0, 1, 1], [], []>} : vector<8x1280xf32>, vector<1280x128xf32>, vector<8x128xf32> -> vector<8x128xf32>
    %c0_3 = arith.constant 0 : index
    %c0_4 = arith.constant 0 : index
    %3 = memref.load %arg3[%c0_3, %c0_4] : memref<1x1xf32, #tpu.memory_space<smem>>
    %4 = vector.broadcast %3 : f32 to vector<8x128xf32>
    %5 = arith.addf %2, %4 : vector<8x128xf32>
    %6 = arith.negf %5 : vector<8x128xf32>
    %7 = math.exp %6 : vector<8x128xf32>
    %cst_5 = arith.constant 1.000000e+00 : f32
    %8 = vector.broadcast %cst_5 : f32 to vector<8x128xf32>
    %9 = arith.addf %8, %7 : vector<8x128xf32>
    %10 = arith.divf %8, %9 : vector<8x128xf32>
    %c0_6 = arith.constant 0 : index
    %c0_7 = arith.constant 0 : index
    %11 = vector.load %arg4[%c0_6, %c0_7] : memref<8x128xf32, #tpu.memory_space<vmem>>, vector<8x128xf32>
    tpu.vector_store %arg4[%c0_6, %c0_7], %10 {strides = array<i32>} : memref<8x128xf32, #tpu.memory_space<vmem>>, vector<8x128xf32>,
    return
  }
  func.func @transform_0(%arg0: i32) -> (i32, i32) {
    %c0_i32 = arith.constant 0 : i32
    %c0_i32_0 = arith.constant 0 : i32
    return %arg0, %c0_i32 : i32, i32
  }
  func.func @transform_1(%arg0: i32) -> (i32, i32) {
    %c0_i32 = arith.constant 0 : i32
    %c0_i32_0 = arith.constant 0 : i32
    %c0_i32_1 = arith.constant 0 : i32
    return %c0_i32, %c0_i32_0 : i32, i32
  }
  func.func @transform_2(%arg0: i32) -> (i32, i32) {
    %c0_i32 = arith.constant 0 : i32
    %c0_i32_0 = arith.constant 0 : i32
    %c0_i32_1 = arith.constant 0 : i32
    return %c0_i32, %c0_i32_0 : i32, i32
  }
  func.func @transform_3(%arg0: i32) -> (i32, i32) {
    %c0_i32 = arith.constant 0 : i32
    %c0_i32_0 = arith.constant 0 : i32
    return %arg0, %c0_i32 : i32, i32
  }
}

</mosaic_0001>

<bundles_post_ra>
// kernel: mymodel_forward.1
= control target key start
LH: loop header
LB: loop body
LE: loop exit
PB: predicated region body
PF: predicated region fallthrough
CT: control target
= control target key end

     0   :  { %s1470_s0 = inlined_call_operand.vmem [shape: f32[8,1280], index: 0, kind: input, shape index: {}]   ;;  %s1471_s1 = inlined_call_operand.vmem [shape: f32[1280,128], index: 1, kind: input, shape index: {}]   ;;  %s1472_s2 = inlined_call_operand.<no memory space> [shape: f32[1,1], index: 2, kind: input, shape index: {}]   ;;  %s1473_s3 = inlined_call_operand.hbm [shape: f32[8,128], index: 3, kind: output, shape index: {}]  }
   0x1   :  { %v42_v0 = vld [vmem:[%s1471_s1 + $0x80] sm:$0xff]  ;;  %v43_v1 = vld [vmem:[%s1471_s1 + $0x88] sm:$0xff]  ;;  %v44_v11 = vld [vmem:[%s1471_s1 + $0x90] sm:$0xff] }
   0x2   :  { %v26_v2 = vld [vmem:[%s1471_s1] sm:$0xff]  ;;  %v735_v3 = vpack.c.bf16 %v43_v1, %v42_v0  ;;  %v27_v4 = vld [vmem:[%s1471_s1 + $0x8] sm:$0xff]  ;;  %v45_v13 = vld [vmem:[%s1471_s1 + $0x98] sm:$0xff] }
   0x3   :  { %v74_v5 = vld [vmem:[%s1471_s1 + $0x180] sm:$0xff]  ;;  %v75_v6 = vld [vmem:[%s1471_s1 + $0x188] sm:$0xff]  ;;  %v737_v7 = vpack.c.bf16 %v27_v4, %v26_v2  ;;  %v28_v14 = vld [vmem:[%s1471_s1 + $0x10] sm:$0xff]  ;;  %v739_v16 = vpack.c.bf16 %v45_v13, %v44_v11 }
   0x4   :  { %v767_v8 = vpack.c.bf16 %v75_v6, %v74_v5  ;;  %v58_v9 = vld [vmem:[%s1471_s1 + $0x100] sm:$0xff]  ;;  %v59_v10 = vld [vmem:[%s1471_s1 + $0x108] sm:$0xff]  ;;  %736 = vmatprep.subr.bf16.mxu0 %v735_v3  ;;  %v29_v15 = vld [vmem:[%s1471_s1 + $0x18] sm:$0xff] }
   0x5   :  { %v769_v12 = vpack.c.bf16 %v59_v10, %v58_v9  ;;  %738 = vmatpush3.bf16.msra.mxu0 %v737_v7  ;;  %v741_v17 = vpack.c.bf16 %v29_v15, %v28_v14  ;;  %v76_v18 = vld [vmem:[%s1471_s1 + $0x190] sm:$0xff]  ;;  %v77_v19 = vld [vmem:[%s1471_s1 + $0x198] sm:$0xff]  ;;  %v46_v23 = vld [vmem:[%s1471_s1 + $0xa0] sm:$0xff] }
   0x6   :  { %768 = vmatprep.subr.bf16.mxu1 %v767_v8  ;;  %v60_v20 = vld [vmem:[%s1471_s1 + $0x110] sm:$0xff]  ;;  %v771_v21 = vpack.c.bf16 %v77_v19, %v76_v18  ;;  %v61_v22 = vld [vmem:[%s1471_s1 + $0x118] sm:$0xff]  ;;  %v47_v24 = vld [vmem:[%s1471_s1 + $0xa8] sm:$0xff]  ;;  %740 = vmatprep.subr.bf16.mxu0 %v739_v16 }
   0x7   :  { %770 = vmatpush3.bf16.msra.mxu1 %v769_v12  ;;  %v773_v25 = vpack.c.bf16 %v61_v22, %v60_v20  ;;  %v743_v26 = vpack.c.bf16 %v47_v24, %v46_v23  ;;  %v30_v27 = vld [vmem:[%s1471_s1 + $0x20] sm:$0xff]  ;;  %v31_v28 = vld [vmem:[%s1471_s1 + $0x28] sm:$0xff]  ;;  %v48_v35 = vld [vmem:[%s1471_s1 + $0xb0] sm:$0xff] }
   0x8   :  { %v78_v29 = vld [vmem:[%s1471_s1 + $0x1a0] sm:$0xff]  ;;  %772 = vmatprep.subr.bf16.mxu1 %v771_v21  ;;  %v79_v30 = vld [vmem:[%s1471_s1 + $0x1a8] sm:$0xff]  ;;  %v745_v33 = vpack.c.bf16 %v31_v28, %v30_v27  ;;  %v49_v36 = vld [vmem:[%s1471_s1 + $0xb8] sm:$0xff] }
   0x9   :  { %v62_v31 = vld [vmem:[%s1471_s1 + $0x120] sm:$0xff]  ;;  %v63_v32 = vld [vmem:[%s1471_s1 + $0x128] sm:$0xff]  ;;  %742 = vmatpush3.bf16.msra.mxu0 %v741_v17  ;;  %v775_v34 = vpack.c.bf16 %v79_v30, %v78_v29  ;;  %v32_v37 = vld [vmem:[%s1471_s1 + $0x30] sm:$0xff]  ;;  %v747_v39 = vpack.c.bf16 %v49_v36, %v48_v35 }
   0xa   :  { %744 = vmatprep.subr.bf16.mxu0 %v743_v26  ;;  %v777_v38 = vpack.c.bf16 %v63_v32, %v62_v31  ;;  %v33_v40 = vld [vmem:[%s1471_s1 + $0x38] sm:$0xff]  ;;  %v80_v41 = vld [vmem:[%s1471_s1 + $0x1b0] sm:$0xff]  ;;  %v50_v46 = vld [vmem:[%s1471_s1 + $0xc0] sm:$0xff] }
   0xb   :  { %774 = vmatpush3.bf16.msra.mxu1 %v773_v25  ;;  %v81_v42 = vld [vmem:[%s1471_s1 + $0x1b8] sm:$0xff]  ;;  %v64_v44 = vld [vmem:[%s1471_s1 + $0x130] sm:$0xff]  ;;  %v51_v47 = vld [vmem:[%s1471_s1 + $0xc8] sm:$0xff]  ;;  %v749_v48 = vpack.c.bf16 %v33_v40, %v32_v37 }
   0xc   :  { %776 = vmatprep.subr.bf16.mxu1 %v775_v34  ;;  %v779_v43 = vpack.c.bf16 %v81_v42, %v80_v41  ;;  %v65_v45 = vld [vmem:[%s1471_s1 + $0x138] sm:$0xff]  ;;  %v82_v49 = vld [vmem:[%s1471_s1 + $0x1c0] sm:$0xff]  ;;  %v83_v50 = vld [vmem:[%s1471_s1 + $0x1c8] sm:$0xff]  ;;  %v751_v52 = vpack.c.bf16 %v51_v47, %v50_v46 }
   0xd   :  { %746 = vmatpush3.bf16.msra.mxu0 %v745_v33  ;;  %v781_v51 = vpack.c.bf16 %v65_v45, %v64_v44  ;;  %v34_v53 = vld [vmem:[%s1471_s1 + $0x40] sm:$0xff]  ;;  %v35_v54 = vld [vmem:[%s1471_s1 + $0x48] sm:$0xff]  ;;  %v783_v56 = vpack.c.bf16 %v83_v50, %v82_v49  ;;  %v52_v58 = vld [vmem:[%s1471_s1 + $0xd0] sm:$0xff] }
   0xe   :  { %748 = vmatprep.subr.bf16.mxu0 %v747_v39  ;;  %v66_v55 = vld [vmem:[%s1471_s1 + $0x140] sm:$0xff]  ;;  %v67_v57 = vld [vmem:[%s1471_s1 + $0x148] sm:$0xff]  ;;  %v53_v59 = vld [vmem:[%s1471_s1 + $0xd8] sm:$0xff]  ;;  %v753_v62 = vpack.c.bf16 %v35_v54, %v34_v53 }
   0xf   :  { %778 = vmatpush3.bf16.msra.mxu1 %v777_v38  ;;  %v84_v60 = vld [vmem:[%s1471_s1 + $0x1d0] sm:$0xff]  ;;  %v85_v61 = vld [vmem:[%s1471_s1 + $0x1d8] sm:$0xff]  ;;  %v785_v63 = vpack.c.bf16 %v67_v57, %v66_v55  ;;  %v755_v0 = vpack.c.bf16 %v53_v59, %v52_v58  ;;  %v54_v6 = vld [vmem:[%s1471_s1 + $0xe0] sm:$0xff] }
  0x10   :  { %780 = vmatprep.subr.bf16.mxu1 %v779_v43  ;;  %v36_v1 = vld [vmem:[%s1471_s1 + $0x50] sm:$0xff]  ;;  %v37_v2 = vld [vmem:[%s1471_s1 + $0x58] sm:$0xff]  ;;  %v787_v4 = vpack.c.bf16 %v85_v61, %v84_v60  ;;  %v55_v7 = vld [vmem:[%s1471_s1 + $0xe8] sm:$0xff] }
  0x11   :  { %750 = vmatpush3.bf16.msra.mxu0 %v749_v48  ;;  %v68_v3 = vld [vmem:[%s1471_s1 + $0x150] sm:$0xff]  ;;  %v69_v5 = vld [vmem:[%s1471_s1 + $0x158] sm:$0xff]  ;;  %v86_v8 = vld [vmem:[%s1471_s1 + $0x1e0] sm:$0xff]  ;;  %v757_v10 = vpack.c.bf16 %v37_v2, %v36_v1  ;;  %v759_v14 = vpack.c.bf16 %v55_v7, %v54_v6 }
  0x12   :  { %752 = vmatprep.subr.bf16.mxu0 %v751_v52  ;;  %v87_v9 = vld [vmem:[%s1471_s1 + $0x1e8] sm:$0xff]  ;;  %v38_v11 = vld [vmem:[%s1471_s1 + $0x60] sm:$0xff]  ;;  %v789_v13 = vpack.c.bf16 %v69_v5, %v68_v3  ;;  %v56_v19 = vld [vmem:[%s1471_s1 + $0xf0] sm:$0xff] }
  0x13   :  { %782 = vmatpush3.bf16.msra.mxu1 %v781_v51  ;;  %v17_v12 = vld [vmem:[%s1470_s0 + $0x8] sm:$0xff]  ;;  %v70_v16 = vld [vmem:[%s1471_s1 + $0x160] sm:$0xff]  ;;  %v791_v18 = vpack.c.bf16 %v87_v9, %v86_v8  ;;  %v57_v20 = vld [vmem:[%s1471_s1 + $0xf8] sm:$0xff] }
  0x14   :  { %784 = vmatprep.subr.bf16.mxu1 %v783_v56  ;;  %v39_v15 = vld [vmem:[%s1471_s1 + $0x68] sm:$0xff]  ;;  %252 = vmatprep.mubr.f32.mxu0 %v17_v12  ;;  %v19_v21 = vld [vmem:[%s1470_s0 + $0x18] sm:$0xff]  ;;  %v88_v22 = vld [vmem:[%s1471_s1 + $0x1f0] sm:$0xff]  ;;  %v763_v26 = vpack.c.bf16 %v57_v20, %v56_v19 }
  0x15   :  { %754 = vmatpush3.bf16.msra.mxu0 %v753_v62  ;;  %v71_v17 = vld [vmem:[%s1471_s1 + $0x168] sm:$0xff]  ;;  %v89_v23 = vld [vmem:[%s1471_s1 + $0x1f8] sm:$0xff]  ;;  %322 = vmatprep.mubr.f32.mxu1 %v19_v21  ;;  %v761_v24 = vpack.c.bf16 %v39_v15, %v38_v11  ;;  %v40_v27 = vld [vmem:[%s1471_s1 + $0x70] sm:$0xff] }
  0x16   :  { %756 = vmatprep.subr.bf16.mxu0 %v755_v0  ;;  %v793_v25 = vpack.c.bf16 %v71_v17, %v70_v16  ;;  %v41_v28 = vld [vmem:[%s1471_s1 + $0x78] sm:$0xff]  ;;  %v72_v29 = vld [vmem:[%s1471_s1 + $0x170] sm:$0xff]  ;;  %v795_v30 = vpack.c.bf16 %v89_v23, %v88_v22  ;;  %v106_v32 = vld [vmem:[%s1471_s1 + $0x280] sm:$0xff] }
  0x17   :  { %786 = vmatpush3.bf16.msra.mxu1 %v785_v63  ;;  %v73_v31 = vld [vmem:[%s1471_s1 + $0x178] sm:$0xff]  ;;  %v107_v33 = vld [vmem:[%s1471_s1 + $0x288] sm:$0xff]  ;;  %v138_v34 = vld [vmem:[%s1471_s1 + $0x380] sm:$0xff]  ;;  %v765_v36 = vpack.c.bf16 %v41_v28, %v40_v27 }
  0x18   :  { %788 = vmatprep.subr.bf16.mxu1 %v787_v4  ;;  %v139_v35 = vld [vmem:[%s1471_s1 + $0x388] sm:$0xff]  ;;  %v797_v37 = vpack.c.bf16 %v73_v31, %v72_v29  ;;  %v799_v38 = vpack.c.bf16 %v107_v33, %v106_v32  ;;  %v90_v39 = vld [vmem:[%s1471_s1 + $0x200] sm:$0xff]  ;;  %v108_v44 = vld [vmem:[%s1471_s1 + $0x290] sm:$0xff] }
  0x19   :  { %758 = vmatpush3.bf16.msra.mxu0 %v757_v10  ;;  %v91_v40 = vld [vmem:[%s1471_s1 + $0x208] sm:$0xff]  ;;  %v122_v41 = vld [vmem:[%s1471_s1 + $0x300] sm:$0xff]  ;;  %v831_v42 = vpack.c.bf16 %v139_v35, %v138_v34  ;;  %v109_v45 = vld [vmem:[%s1471_s1 + $0x298] sm:$0xff] }
  0x1a   :  { %760 = vmatprep.subr.bf16.mxu0 %v759_v14  ;;  %v123_v43 = vld [vmem:[%s1471_s1 + $0x308] sm:$0xff]  ;;  %v140_v46 = vld [vmem:[%s1471_s1 + $0x390] sm:$0xff]  ;;  %v141_v47 = vld [vmem:[%s1471_s1 + $0x398] sm:$0xff]  ;;  %v801_v49 = vpack.c.bf16 %v91_v40, %v90_v39  ;;  %v803_v52 = vpack.c.bf16 %v109_v45, %v108_v44 }
  0x1b   :  { %790 = vmatpush3.bf16.msra.mxu1 %v789_v13  ;;  %v16_v48 = vld [vmem:[%s1470_s0] sm:$0xff]  ;;  %v18_v50 = vld [vmem:[%s1470_s0 + $0x10] sm:$0xff]  ;;  %v833_v51 = vpack.c.bf16 %v123_v43, %v122_v41  ;;  %v93_v54 = vld [vmem:[%s1471_s1 + $0x218] sm:$0xff]  ;;  %v835_v56 = vpack.c.bf16 %v141_v47, %v140_v46 }
  0x1c   :  { %792 = vmatprep.subr.bf16.mxu1 %v791_v18  ;;  %v92_v53 = vld [vmem:[%s1471_s1 + $0x210] sm:$0xff]  ;;  %v125_v57 = vld [vmem:[%s1471_s1 + $0x318] sm:$0xff]  ;;  %v110_v58 = vld [vmem:[%s1471_s1 + $0x2a0] sm:$0xff] }
  0x1d   :  { %762 = vmatpush3.bf16.msra.mxu0 %v761_v24  ;;  %v124_v55 = vld [vmem:[%s1471_s1 + $0x310] sm:$0xff]  ;;  %v111_v59 = vld [vmem:[%s1471_s1 + $0x2a8] sm:$0xff]  ;;  %v142_v60 = vld [vmem:[%s1471_s1 + $0x3a0] sm:$0xff]  ;;  %v805_v62 = vpack.c.bf16 %v93_v54, %v92_v53 }
  0x1e   :  { %764 = vmatprep.subr.bf16.mxu0 %v763_v26  ;;  %v143_v61 = vld [vmem:[%s1471_s1 + $0x3a8] sm:$0xff]  ;;  %v837_v63 = vpack.c.bf16 %v125_v57, %v124_v55  ;;  %v807_v0 = vpack.c.bf16 %v111_v59, %v110_v58  ;;  %v94_v1 = vld [vmem:[%s1471_s1 + $0x220] sm:$0xff]  ;;  %v112_v6 = vld [vmem:[%s1471_s1 + $0x2b0] sm:$0xff] }
  0x1f   :  { %794 = vmatpush3.bf16.msra.mxu1 %v793_v25  ;;  %v95_v2 = vld [vmem:[%s1471_s1 + $0x228] sm:$0xff]  ;;  %v126_v3 = vld [vmem:[%s1471_s1 + $0x320] sm:$0xff]  ;;  %v839_v4 = vpack.c.bf16 %v143_v61, %v142_v60  ;;  %v113_v7 = vld [vmem:[%s1471_s1 + $0x2b8] sm:$0xff] }
  0x20   :  { %796 = vmatprep.subr.bf16.mxu1 %v795_v30  ;;  %v127_v5 = vld [vmem:[%s1471_s1 + $0x328] sm:$0xff]  ;;  %v144_v8 = vld [vmem:[%s1471_s1 + $0x3b0] sm:$0xff]  ;;  %v145_v9 = vld [vmem:[%s1471_s1 + $0x3b8] sm:$0xff]  ;;  %v809_v10 = vpack.c.bf16 %v95_v2, %v94_v1  ;;  %v811_v12 = vpack.c.bf16 %v113_v7, %v112_v6 }
  0x21   :  { %766 = vmatpush3.bf16.msra.mxu0 %v765_v36  ;;  %v841_v11 = vpack.c.bf16 %v127_v5, %v126_v3  ;;  %v96_v13 = vld [vmem:[%s1471_s1 + $0x230] sm:$0xff]  ;;  %v97_v14 = vld [vmem:[%s1471_s1 + $0x238] sm:$0xff]  ;;  %v843_v16 = vpack.c.bf16 %v145_v9, %v144_v8  ;;  %v114_v18 = vld [vmem:[%s1471_s1 + $0x2c0] sm:$0xff] }
  0x22   :  { %800 = vmatprep.subr.bf16.mxu0 %v799_v38  ;;  %v128_v15 = vld [vmem:[%s1471_s1 + $0x330] sm:$0xff]  ;;  %v129_v17 = vld [vmem:[%s1471_s1 + $0x338] sm:$0xff]  ;;  %v115_v19 = vld [vmem:[%s1471_s1 + $0x2c8] sm:$0xff]  ;;  %v813_v23 = vpack.c.bf16 %v97_v14, %v96_v13 }
  0x23   :  { %798 = vmatpush3.bf16.msra.mxu1 %v797_v37  ;;  %v146_v20 = vld [vmem:[%s1471_s1 + $0x3c0] sm:$0xff]  ;;  %v147_v21 = vld [vmem:[%s1471_s1 + $0x3c8] sm:$0xff]  ;;  %v845_v25 = vpack.c.bf16 %v129_v17, %v128_v15  ;;  %v815_v26 = vpack.c.bf16 %v115_v19, %v114_v18  ;;  %v23_v29 = vld [vmem:[%s1470_s0 + $0x38] sm:$0xff] }
  0x24   :  { %832 = vmatprep.subr.bf16.mxu1 %v831_v42  ;;  %253 = vmatmul.mubr.f32.vlgmr.msra.gmra.mrb[0].mxu0 %v16_v48  ;;  %v21_v22 = vld [vmem:[%s1470_s0 + $0x28] sm:$0xff]  ;;  %v98_v24 = vld [vmem:[%s1471_s1 + $0x240] sm:$0xff]  ;;  %v847_v30 = vpack.c.bf16 %v147_v21, %v146_v20  ;;  %v116_v32 = vld [vmem:[%s1471_s1 + $0x2d0] sm:$0xff] }
  0x25   :  { %802 = vmatpush3.bf16.msra.mxu0 %v801_v49  ;;  %392 = vmatprep.mubr.f32.mxu0 %v21_v22  ;;  %v99_v27 = vld [vmem:[%s1471_s1 + $0x248] sm:$0xff]  ;;  %v130_v28 = vld [vmem:[%s1471_s1 + $0x340] sm:$0xff]  ;;  %v117_v33 = vld [vmem:[%s1471_s1 + $0x2d8] sm:$0xff] }
  0x26   :  { %323 = vmatmul.mubr.f32.vlgmr.msra.gmra.mrb[0].mxu1 %v18_v50  ;;  %804 = vmatprep.subr.bf16.mxu0 %v803_v52  ;;  %v131_v31 = vld [vmem:[%s1471_s1 + $0x348] sm:$0xff]  ;;  %v148_v34 = vld [vmem:[%s1471_s1 + $0x3d0] sm:$0xff]  ;;  %v149_v35 = vld [vmem:[%s1471_s1 + $0x3d8] sm:$0xff]  ;;  %v817_v36 = vpack.c.bf16 %v99_v27, %v98_v24  ;;  %v819_v38 = vpack.c.bf16 %v117_v33, %v116_v32 }
  0x27   :  { %834 = vmatpush3.bf16.msra.mxu1 %v833_v51  ;;  %462 = vmatprep.mubr.f32.mxu1 %v23_v29  ;;  %v849_v37 = vpack.c.bf16 %v131_v31, %v130_v28  ;;  %v100_v39 = vld [vmem:[%s1471_s1 + $0x250] sm:$0xff]  ;;  %v101_v40 = vld [vmem:[%s1471_s1 + $0x258] sm:$0xff]  ;;  %v851_v42 = vpack.c.bf16 %v149_v35, %v148_v34  ;;  %v118_v44 = vld [vmem:[%s1471_s1 + $0x2e0] sm:$0xff] }
  0x28   :  { %836 = vmatprep.subr.bf16.mxu1 %v835_v56  ;;  %v132_v41 = vld [vmem:[%s1471_s1 + $0x350] sm:$0xff]  ;;  %v133_v43 = vld [vmem:[%s1471_s1 + $0x358] sm:$0xff]  ;;  %v119_v45 = vld [vmem:[%s1471_s1 + $0x2e8] sm:$0xff]  ;;  %v821_v48 = vpack.c.bf16 %v101_v40, %v100_v39 }
  0x29   :  { %806 = vmatpush3.bf16.msra.mxu0 %v805_v62  ;;  %v150_v46 = vld [vmem:[%s1471_s1 + $0x3e0] sm:$0xff]  ;;  %v151_v47 = vld [vmem:[%s1471_s1 + $0x3e8] sm:$0xff]  ;;  %v853_v49 = vpack.c.bf16 %v133_v43, %v132_v41  ;;  %v823_v50 = vpack.c.bf16 %v119_v45, %v118_v44  ;;  %v120_v56 = vld [vmem:[%s1471_s1 + $0x2f0] sm:$0xff] }
  0x2a   :  { %808 = vmatprep.subr.bf16.mxu0 %v807_v0  ;;  %v102_v51 = vld [vmem:[%s1471_s1 + $0x260] sm:$0xff]  ;;  %v103_v52 = vld [vmem:[%s1471_s1 + $0x268] sm:$0xff]  ;;  %v855_v54 = vpack.c.bf16 %v151_v47, %v150_v46  ;;  %v121_v57 = vld [vmem:[%s1471_s1 + $0x2f8] sm:$0xff] }
  0x2b   :  { %838 = vmatpush3.bf16.msra.mxu1 %v837_v63  ;;  %v134_v53 = vld [vmem:[%s1471_s1 + $0x360] sm:$0xff]  ;;  %v135_v55 = vld [vmem:[%s1471_s1 + $0x368] sm:$0xff]  ;;  %v152_v58 = vld [vmem:[%s1471_s1 + $0x3f0] sm:$0xff]  ;;  %v825_v60 = vpack.c.bf16 %v103_v52, %v102_v51 }
  0x2c   :  { %840 = vmatprep.subr.bf16.mxu1 %v839_v4  ;;  %v153_v59 = vld [vmem:[%s1471_s1 + $0x3f8] sm:$0xff] }
  0x2d   :  { %810 = vmatpush3.bf16.msra.mxu0 %v809_v10 }
  0x2e   :  { %812 = vmatprep.subr.bf16.mxu0 %v811_v12 }
  0x2f   :  { %842 = vmatpush3.bf16.msra.mxu1 %v841_v11 }
  0x30   :  { %844 = vmatprep.subr.bf16.mxu1 %v843_v16 }
  0x31   :  { %814 = vmatpush3.bf16.msra.mxu0 %v813_v23 }
  0x32   :  { %816 = vmatprep.subr.bf16.mxu0 %v815_v26 }
  0x33   :  { %846 = vmatpush3.bf16.msra.mxu1 %v845_v25 }
  0x34   :  { %848 = vmatprep.subr.bf16.mxu1 %v847_v30 }
  0x35   :  { %818 = vmatpush3.bf16.msra.mxu0 %v817_v36 }
  0x36   :  { %820 = vmatprep.subr.bf16.mxu0 %v819_v38 }
  0x37   :  { %850 = vmatpush3.bf16.msra.mxu1 %v849_v37 }
  0x38   :  { %852 = vmatprep.subr.bf16.mxu1 %v851_v42 }
  0x39   :  { %822 = vmatpush3.bf16.msra.mxu0 %v821_v48 }
  0x3a   :  { %9 = vsyncpa [#allocation4], 0  ;;  %824 = vmatprep.subr.bf16.mxu0 %v823_v50  ;;  %v857_v61 = vpack.c.bf16 %v135_v55, %v134_v53  ;;  %v827_v62 = vpack.c.bf16 %v121_v57, %v120_v56  ;;  %v104_v63 = vld [vmem:[%s1471_s1 + $0x270] sm:$0xff]  ;;  %v105_v0 = vld [vmem:[%s1471_s1 + $0x278] sm:$0xff]  ;;  %v859_v2 = vpack.c.bf16 %v153_v59, %v152_v58  ;;  %v187_v59 = vstv %s1472_s2 }
  0x3b   :  { %854 = vmatpush3.bf16.msra.mxu1 %v853_v49  ;;  %v136_v1 = vld [vmem:[%s1471_s1 + $0x370] sm:$0xff]  ;;  %v137_v3 = vld [vmem:[%s1471_s1 + $0x378] sm:$0xff]  ;;  %v170_v4 = vld [vmem:[%s1471_s1 + $0x480] sm:$0xff]  ;;  %v829_v6 = vpack.c.bf16 %v105_v0, %v104_v63 }
  0x3c   :  { %856 = vmatprep.subr.bf16.mxu1 %v855_v54  ;;  %v171_v5 = vld [vmem:[%s1471_s1 + $0x488] sm:$0xff]  ;;  %v861_v7 = vpack.c.bf16 %v137_v3, %v136_v1  ;;  %v154_v9 = vld [vmem:[%s1471_s1 + $0x400] sm:$0xff]  ;;  %v172_v11 = vld [vmem:[%s1471_s1 + $0x490] sm:$0xff] }
  0x3d   :  { %826 = vmatpush3.bf16.msra.mxu0 %v825_v60  ;;  %v863_v8 = vpack.c.bf16 %v171_v5, %v170_v4  ;;  %v155_v10 = vld [vmem:[%s1471_s1 + $0x408] sm:$0xff]  ;;  %v173_v12 = vld [vmem:[%s1471_s1 + $0x498] sm:$0xff]  ;;  %v20_v13 = vld [vmem:[%s1470_s0 + $0x20] sm:$0xff] }
  0x3e   :  { %828 = vmatprep.subr.bf16.mxu0 %v827_v62  ;;  %v865_v14 = vpack.c.bf16 %v155_v10, %v154_v9  ;;  %v22_v15 = vld [vmem:[%s1470_s0 + $0x30] sm:$0xff]  ;;  %v867_v16 = vpack.c.bf16 %v173_v12, %v172_v11  ;;  %v157_v18 = vld [vmem:[%s1471_s1 + $0x418] sm:$0xff]  ;;  %v174_v19 = vld [vmem:[%s1471_s1 + $0x4a0] sm:$0xff] }
  0x3f   :  { %858 = vmatpush3.bf16.msra.mxu1 %v857_v61  ;;  %v156_v17 = vld [vmem:[%s1471_s1 + $0x410] sm:$0xff]  ;;  %v175_v20 = vld [vmem:[%s1471_s1 + $0x4a8] sm:$0xff]  ;;  %v158_v24 = vld [vmem:[%s1471_s1 + $0x420] sm:$0xff] }
  0x40   :  { %860 = vmatprep.subr.bf16.mxu1 %v859_v2  ;;  %v25_v21 = vld [vmem:[%s1470_s0 + $0x48] sm:$0xff]  ;;  %v869_v22 = vpack.c.bf16 %v157_v18, %v156_v17  ;;  %v871_v23 = vpack.c.bf16 %v175_v20, %v174_v19  ;;  %v176_v26 = vld [vmem:[%s1471_s1 + $0x4b0] sm:$0xff]  ;;  %v177_v27 = vld [vmem:[%s1471_s1 + $0x4b8] sm:$0xff] }
  0x41   :  { %830 = vmatpush3.bf16.msra.mxu0 %v829_v6  ;;  %v159_v25 = vld [vmem:[%s1471_s1 + $0x428] sm:$0xff]  ;;  %v875_v29 = vpack.c.bf16 %v177_v27, %v176_v26  ;;  %v160_v30 = vld [vmem:[%s1471_s1 + $0x430] sm:$0xff]  ;;  %v161_v31 = vld [vmem:[%s1471_s1 + $0x438] sm:$0xff] }
  0x42   :  { %864 = vmatprep.subr.bf16.mxu0 %v863_v8  ;;  %v873_v28 = vpack.c.bf16 %v159_v25, %v158_v24  ;;  %v178_v32 = vld [vmem:[%s1471_s1 + $0x4c0] sm:$0xff]  ;;  %v179_v33 = vld [vmem:[%s1471_s1 + $0x4c8] sm:$0xff]  ;;  %v877_v34 = vpack.c.bf16 %v161_v31, %v160_v30  ;;  %v180_v38 = vld [vmem:[%s1471_s1 + $0x4d0] sm:$0xff] }
  0x43   :  { %862 = vmatpush3.bf16.msra.mxu1 %v861_v7  ;;  %v879_v35 = vpack.c.bf16 %v179_v33, %v178_v32  ;;  %v162_v36 = vld [vmem:[%s1471_s1 + $0x440] sm:$0xff]  ;;  %v163_v37 = vld [vmem:[%s1471_s1 + $0x448] sm:$0xff]  ;;  %v181_v39 = vld [vmem:[%s1471_s1 + $0x4d8] sm:$0xff] }
  0x44   :  { %393 = vmatmul.mubr.f32.vlgmr.msra.gmra.mrb[2].mxu0 %v20_v13  ;;  %v881_v40 = vpack.c.bf16 %v163_v37, %v162_v36  ;;  %v883_v41 = vpack.c.bf16 %v181_v39, %v180_v38  ;;  %v164_v42 = vld [vmem:[%s1471_s1 + $0x450] sm:$0xff]  ;;  %v165_v43 = vld [vmem:[%s1471_s1 + $0x458] sm:$0xff]  ;;  %v182_v44 = vld [vmem:[%s1471_s1 + $0x4e0] sm:$0xff] }
  0x45   :  { %866 = vmatpush3.bf16.msra.mxu0 %v865_v14  ;;  %532 = vmatprep.mubr.f32.mxu0 %v25_v21  ;;  %v183_v45 = vld [vmem:[%s1471_s1 + $0x4e8] sm:$0xff]  ;;  %v885_v46 = vpack.c.bf16 %v165_v43, %v164_v42  ;;  %v166_v48 = vld [vmem:[%s1471_s1 + $0x460] sm:$0xff]  ;;  %v184_v50 = vld [vmem:[%s1471_s1 + $0x4f0] sm:$0xff] }
  0x46   :  { %463 = vmatmul.mubr.f32.vlgmr.msra.gmra.mrb[2].mxu1 %v22_v15  ;;  %868 = vmatprep.subr.bf16.mxu0 %v867_v16  ;;  %v887_v47 = vpack.c.bf16 %v183_v45, %v182_v44  ;;  %v167_v49 = vld [vmem:[%s1471_s1 + $0x468] sm:$0xff]  ;;  %v185_v51 = vld [vmem:[%s1471_s1 + $0x4f8] sm:$0xff]  ;;  %v168_v54 = vld [vmem:[%s1471_s1 + $0x470] sm:$0xff] }
  0x47   :  { %v889_v52 = vpack.c.bf16 %v167_v49, %v166_v48  ;;  %v891_v53 = vpack.c.bf16 %v185_v51, %v184_v50  ;;  %v169_v55 = vld [vmem:[%s1471_s1 + $0x478] sm:$0xff]  ;;  %v24_v57 = vld [vmem:[%s1470_s0 + $0x40] sm:$0xff]  ;;  %s924_s0 = smov [#allocation3]  }
  0x48   :  { %v893_v56 = vpack.c.bf16 %v169_v55, %v168_v54  ;;  %s551_s1 = sshll.u32 %s924_s0, 4  ;;  %s552_s1 = int_to_ptr.vmem [resolvable:$true] %s551_s1 }
  0x49   :  { %870 = vmatpush3.bf16.msra.mxu0 %v869_v22  ;;  %s900_s2 = scalar_lea.vmem %s552_s1, 128  ;;  %p905_p1 = scmp.lt.s32.totalorder %s552_s1, %s552_s1 }
  0x4a   :  { %872 = vmatprep.subr.bf16.mxu0 %v871_v23  ;;  %p901_p0 = scmp.ne.s32.totalorder %s552_s1, %s900_s2  ;;  %p906_p2 = scmp.lt.s32.totalorder %s900_s2, %s900_s2 }
  0x4c   :  { %p907_p3 = por %p906_p2, %p905_p1 }
  0x4d   :  { %874 = vmatpush3.bf16.msra.mxu0 %v873_v28 }
  0x4e   :  { %876 = vmatprep.subr.bf16.mxu0 %v875_v29  ;;  %p908_p4 = pnand %p907_p3, %p901_p0 }
  0x51   :  { %878 = vmatpush3.bf16.msra.mxu0 %v877_v34 }
  0x52   :  { %880 = vmatprep.subr.bf16.mxu0 %v879_v35 }
  0x55   :  { %882 = vmatpush3.bf16.msra.mxu0 %v881_v40 }
  0x56   :  { %884 = vmatprep.subr.bf16.mxu0 %v883_v41 }
  0x59   :  { %886 = vmatpush3.bf16.msra.mxu0 %v885_v46 }
  0x5a   :  { %888 = vmatprep.subr.bf16.mxu0 %v887_v47 }
  0x5d   :  { %890 = vmatpush3.bf16.msra.mxu0 %v889_v52 }
  0x5e   :  { %892 = vmatprep.subr.bf16.mxu0 %v891_v53 }
  0x61   :  { %894 = vmatpush3.bf16.msra.mxu0 %v893_v56 }
  0x64   :  { %533 = vmatmul.mubr.f32.vlgmr.msra.gmra.mrb[4].mxu0 %v24_v57 }
  0xf7   :  { %v592_v58 = vpop.f32.mrb[0].mxu0 }
  0xf8   :  { %v593_v60 = vpop.f32.mrb[1].mxu0 }
  0xf9   :  { %v627_v61 = vpop.f32.mrb[0].mxu1  ;;  %v594_v62 = vadd.f32 %v593_v60, %v592_v58 }
  0xfa   :  { %v628_v63 = vpop.f32.mrb[1].mxu1 }
  0xfb   :  { %v629_v0 = vadd.f32 %v628_v63, %v627_v61  ;;  %v255_v1 = vadd.f32 %v594_v62, %v187_v59 }
  0xfd   :  { %v325_v2 = vadd.f32 %v629_v0, %v255_v1 }
 0x117   :  { %v662_v3 = vpop.f32.mrb[2].mxu0 }
 0x118   :  { %v663_v4 = vpop.f32.mrb[3].mxu0 }
 0x119   :  { %v697_v5 = vpop.f32.mrb[2].mxu1  ;;  %v664_v6 = vadd.f32 %v663_v4, %v662_v3 }
 0x11a   :  { %v698_v7 = vpop.f32.mrb[3].mxu1 }
 0x11b   :  { %v699_v8 = vadd.f32 %v698_v7, %v697_v5  ;;  %v395_v9 = vadd.f32 %v664_v6, %v325_v2 }
 0x11d   :  { %v465_v10 = vadd.f32 %v699_v8, %v395_v9 }
 0x137   :  { %v732_v11 = vpop.f32.mrb[4].mxu0 }
 0x138   :  { %v733_v12 = vpop.f32.mrb[5].mxu0 }
 0x139   :  { %v734_v13 = vadd.f32 %v733_v12, %v732_v11 }
 0x13b   :  { %v535_v14 = vadd.f32 %v734_v13, %v465_v10 }
 0x13d   :  { %v559_v15 = vmul.f32 -1.442695, %v535_v14 }
 0x13f   :  { %896 = vpow2.f32 %v559_v15 }
 0x149   :  { %v897_v16 = vpop.eup %896 }
 0x14a   :  { %v541_v17 = vadd.f32 1.0, %v897_v16 }
 0x14c   :  { %898 = vrcp.f32 %v541_v17 }
 0x156   :  { %v899_v18 = vpop.eup %898 }
 0x157   :  { %544 = vst [vmem:[#allocation3] sm:$0xff] %v899_v18 }
 0x158   :  { %911 = shalt.err (!%p908_p4)
}
 0x159   :  { %s912_s5 = scalar_lea.hbm %s1473_s3, 128 }
 0x15a   :  { %p913_p5 = scmp.ne.s32.totalorder %s1473_s3, %s912_s5  ;;  %p916_p6 = scmp.lt.u32.totalorder %s912_s5, %s1473_s3 }
 0x15c   :  { %p918_p7 = pnand %p916_p6, %p913_p5 }
 0x15e   :  { %921 = shalt.err (!%p918_p7)
}
 0x15f   :  { %554 = dma.vmem_to_hbm [thread:$0]  %s552_s1, 128, %s1473_s3, [#allocation4]  }
 0x160   :  { %922 = dma.done.wait [#allocation4], 128  }
 0x161   :  { %923 = vsyncadd [#allocation4], 4294967168 }
 0x162   :  { %558 = vsyncpa [#allocation4], 1 }

</bundles_post_ra>
